<compile_context>
chip_gen: v5e
topology: v5e:2x2
jax: 0.10.0
libtpu: 0.0.40
codegen_flags: <defaults>
</compile_context>

<pallas_src>
import functools
import math

import jax
import jax.numpy as jnp
from jax.experimental import pallas as pl
from jax.experimental.pallas import tpu as pltpu


def _round_up(x, m):
    return (x + m - 1) // m * m


def _emb_kernel(idx_ref, tab_ref, out_ref, *, ncols, pack):
    """out[r] = concat_h( onehot(idx[r, h*ncols:(h+1)*ncols]) @ table_copy_h ).

    idx_ref : (tp, pack*ncols) int32 -- combined-table row ids, all in [0, k1).
    tab_ref : (pack*k1_pad, pack*D) f32 -- block-diagonal packed table; copy h
              occupies rows [h*k1_pad, h*k1_pad + k1) and lanes [h*D, (h+1)*D).
    out_ref : (tp, pack*D) f32 -- lane-dense packed output.
    """
    tp = idx_ref.shape[0]
    khalf = tab_ref.shape[0] // pack
    idx = idx_ref[...]

    # One iota per half-range (khalf wide), shared by all index columns.
    iota = jax.lax.broadcasted_iota(jnp.int32, (tp, khalf), 1)

    acc = None
    for h in range(pack):
        base = h * ncols
        # Per-column row ranges are disjoint (block-diagonal offsets + PE
        # block), so boolean OR == sum; convert to f32 once at the end.
        m = iota == idx[:, base:base + 1]
        for c in range(1, ncols):
            m = jnp.logical_or(m, iota == idx[:, base + c:base + c + 1])
        part = jnp.dot(m.astype(jnp.float32),
                       tab_ref[h * khalf:(h + 1) * khalf, :],
                       preferred_element_type=jnp.float32)
        acc = part if acc is None else acc + part

    out_ref[...] = acc.astype(out_ref.dtype)


def make_positional_encoding(max_len, dim):
    position = jnp.arange(max_len, dtype=jnp.float32)[:, None]
    div_term = jnp.exp(jnp.arange(0, dim, 2, dtype=jnp.float32)
                       * -(math.log(10000.0) / dim))
    pe = jnp.zeros((max_len, dim), jnp.float32)
    pe = pe.at[:, 0::2].set(jnp.sin(position * div_term))
    pe = pe.at[:, 1::2].set(jnp.cos(position * div_term))
    return pe


def prepare_embeddings(tables, pe, *, max_seq_len=64, position_encoding=True):
    """Module-init-time prep (hoisted out of the per-call path).

    Builds the packed block-diagonal table once; depends only on the weights,
    max_seq_len and D, never on the per-call source.
    """
    emb_dims = [int(t.shape[1]) for t in tables]
    vocabs = [int(t.shape[0]) for t in tables]
    D = int(sum(emb_dims))
    scale = math.sqrt(D) if position_encoding else 1.0

    row_off = [0]
    for v in vocabs:
        row_off.append(row_off[-1] + v)
    v_tot = row_off[-1]

    n_pe = max_seq_len if position_encoding else 0
    k1 = v_tot + n_pe
    k1_pad = _round_up(max(k1, 8), 128)        # per-half contraction pad (128)

    # Pack 2 tokens per output row when that makes the lane dim a multiple of
    # 128 (D=64 here); otherwise fall back to one token per row.
    pack = 2 if (D % 128 != 0 and (2 * D) % 128 == 0) else 1
    lanes = pack * D

    # Combined block-diagonal table: features * sqrt(D), PE rows appended.
    t_comb = jnp.zeros((k1_pad, D), jnp.float32)
    col = 0
    for f, t in enumerate(tables):
        t_comb = t_comb.at[row_off[f]:row_off[f] + vocabs[f],
                           col:col + emb_dims[f]].set(
                               t.astype(jnp.float32) * scale)
        col += emb_dims[f]
    if position_encoding:
        t_comb = t_comb.at[v_tot:v_tot + n_pe, :].set(
            pe[:n_pe].astype(jnp.float32))

    # Copy h feeds output lanes [h*D, (h+1)*D) from rows [h*k1_pad, ...).
    t2 = jnp.zeros((pack * k1_pad, lanes), jnp.float32)
    for h in range(pack):
        t2 = t2.at[h * k1_pad:(h + 1) * k1_pad, h * D:(h + 1) * D].set(t_comb)

    meta = dict(vocabs=vocabs, emb_dims=emb_dims, D=D, row_off=row_off,
                v_tot=v_tot, max_seq_len=max_seq_len,
                position_encoding=position_encoding,
                k1_pad=k1_pad, pack=pack, lanes=lanes,
                ncols=len(tables) + (1 if position_encoding else 0))
    return t2, meta


def embeddings_forward(source, t2, meta, *, tile_rows=1024):
    """source: (seq_len, batch, nfeat) int32 -> (seq_len, batch, D) f32.

    feat_merge='concat', PositionalEncoding with dropout p=0, step=None.
    """
    # TODO(synk): dropout with p>0 (training) and the step!=None decode path
    # of PositionalEncoding are not implemented.
    seq_len, batch, nfeat = source.shape
    vocabs = meta["vocabs"]
    assert nfeat == len(vocabs)
    D, ncols, pack = meta["D"], meta["ncols"], meta["pack"]
    lanes, k1_pad, v_tot = meta["lanes"], meta["k1_pad"], meta["v_tot"]
    pe_on = meta["position_encoding"]
    if pe_on:
        assert seq_len <= meta["max_seq_len"], "increase max_seq_len in prep"

    N = seq_len * batch

    # Combined-table row indices: clamp per feature (jnp.take-style) + offset.
    offs = jnp.asarray(meta["row_off"][:nfeat], jnp.int32)
    lims = jnp.asarray([v - 1 for v in vocabs], jnp.int32)
    idx = source.reshape(N, nfeat).astype(jnp.int32)
    idx = jnp.clip(idx, 0, lims[None, :]) + offs[None, :]
    if pe_on:
        pos = (jnp.arange(N, dtype=jnp.int32) // batch) + v_tot
        idx = jnp.concatenate([idx, pos[:, None]], axis=1)

    # Pack `pack` consecutive flat tokens into one lane-dense output row.
    n_even = _round_up(N, pack)
    idx = jnp.pad(idx, ((0, n_even - N), (0, 0)))   # pad rows sliced off later
    n_rows = n_even // pack
    idx2 = idx.reshape(n_rows, pack * ncols)

    # Tile rows; cap at ceil(n_rows/2) so the "parallel" grid has >= 2 steps
    # when possible (both v7x TensorCores get work).
    tp = max(8, min(tile_rows, _round_up((n_rows + 1) // 2, 8)))

    # Gate the tile size against device VMEM (resident table + double-buffered
    # idx/out tiles + the per-half one-hot temporaries).
    try:
        vmem_cap = int(getattr(pltpu.get_tpu_info(),
                               "vmem_capacity_bytes", 64 << 20))
    except Exception:
        vmem_cap = 64 << 20
    budget = vmem_cap // 2
    tab_bytes = int(t2.size) * 4

    def _step_bytes(t):
        return 2 * t * lanes * 4 + 2 * t * 128 * 4 + pack * t * k1_pad * 4

    while tp > 8 and tab_bytes + _step_bytes(tp) > budget:
        tp = max(8, _round_up(tp // 2, 8))

    n_pad = _round_up(n_rows, tp)
    idx2 = jnp.pad(idx2, ((0, n_pad - n_rows), (0, 0)))
    grid = (n_pad // tp,)

    kernel = functools.partial(_emb_kernel, ncols=ncols, pack=pack)
    out = pl.pallas_call(
        kernel,
        out_shape=jax.ShapeDtypeStruct((n_pad, lanes), jnp.float32),
        grid_spec=pltpu.PrefetchScalarGridSpec(
            num_scalar_prefetch=0,
            grid=grid,
            in_specs=[
                pl.BlockSpec((tp, pack * ncols), lambda i: (i, 0)),
                # Constant block index: Mosaic only DMAs the table once; for
                # very large vocab tables switch to a fully VMEM-resident /
                # single-buffered spec.
                pl.BlockSpec((pack * k1_pad, lanes), lambda i: (0, 0)),
            ],
            out_specs=pl.BlockSpec((tp, lanes), lambda i: (i, 0)),
        ),
        compiler_params=pltpu.CompilerParams(
            dimension_semantics=("parallel",)),
    )(idx2, t2)

    # Unpack: (n_rows, pack*D) -> (n_even, D) -> (seq_len, batch, D).
    out = out[:n_rows].reshape(n_even, D)[:N]
    return out.reshape(seq_len, batch, D)


def reference_forward(source, tables, pe):
    seq_len, batch, _ = source.shape
    embs = [jnp.take(t, source[:, :, f], axis=0) for f, t in enumerate(tables)]
    emb = jnp.concatenate(embs, axis=-1)
    D = emb.shape[-1]
    return emb * math.sqrt(D) + pe[:seq_len][:, None, :]


if __name__ == "__main__":
    key = jax.random.PRNGKey(0)

    seq_len, batch = 8, 2
    word_vocab, word_dim, word_pad = 100, 32, 1
    feat_vocabs = [20, 30]
    feat_dims = [16, 16]            # vocab <= 1000 -> dim 16 (module logic)
    feat_pads = [0, 0]

    vocabs = [word_vocab] + feat_vocabs
    dims = [word_dim] + feat_dims
    pads = [word_pad] + feat_pads
    D = sum(dims)

    keys = jax.random.split(key, len(vocabs) + 1)
    tables = []
    for k, v, d, p in zip(keys[:-1], vocabs, dims, pads):
        t = jax.random.normal(k, (v, d), jnp.float32)   # nn.Embedding ~ N(0,1)
        t = t.at[p].set(0.0)                            # padding_idx row = 0
        tables.append(t)

    pe = make_positional_encoding(5000, D)

    # Module-init time: build the packed block-diagonal table once (hoisted
    # out of the per-call path per the perf review).
    t2, meta = prepare_embeddings(tables, pe, max_seq_len=64,
                                  position_encoding=True)

    src_key = keys[-1]
    cols = [jax.random.randint(jax.random.fold_in(src_key, i),
                               (seq_len, batch, 1), 0, v)
            for i, v in enumerate(vocabs)]
    source = jnp.concatenate(cols, axis=2).astype(jnp.int32)

    fwd = jax.jit(lambda s, t: embeddings_forward(s, t, meta))
    out = jax.block_until_ready(fwd(source, t2))

    ref = reference_forward(source, tables, pe)
    assert out.shape == (seq_len, batch, D)
    assert jnp.allclose(out, ref, atol=1e-4, rtol=1e-4)

    print("KERNEL_OK")
</pallas_src>

<mosaic_0001>
module attributes {stable_mosaic.version = 11 : i64} {
  func.func @_emb_kernel(%arg0: i32, %arg1: memref<8x8xi32, #tpu.memory_space<vmem>>, %arg2: memref<512x128xf32, #tpu.memory_space<vmem>>, %arg3: memref<8x128xf32, #tpu.memory_space<vmem>>) attributes {dimension_semantics = [#tpu.dimension_semantics<parallel>], iteration_bounds = array<i64: 1>, scalar_prefetch = 0 : i64, scratch_operands = 0 : i64, tpu.core_type = #tpu.core_type<tc>, window_params = [{transform_indices = @transform_0, window_bounds = array<i64: 8, 8>}, {pipeline_mode = #tpu.pipeline_mode<synchronous>, transform_indices = @transform_1, window_bounds = array<i64: 512, 128>}, {transform_indices = @transform_2, window_bounds = array<i64: 8, 128>}]} {
    %c0 = arith.constant 0 : index
    %c0_0 = arith.constant 0 : index
    %0 = vector.load %arg1[%c0, %c0_0] : memref<8x8xi32, #tpu.memory_space<vmem>>, vector<8x8xi32>
    %1 = tpu.iota {dimensions = array<i32: 1>} : vector<8x256xi32>
    %2 = vector.extract_strided_slice %0 {offsets = [0, 0], sizes = [8, 1], strides = [1, 1]} : vector<8x8xi32> to vector<8x1xi32>
    %3 = vector.broadcast %2 : vector<8x1xi32> to vector<8x256xi32>
    %4 = arith.cmpi eq, %1, %3 : vector<8x256xi32>
    %5 = vector.extract_strided_slice %0 {offsets = [0, 1], sizes = [8, 1], strides = [1, 1]} : vector<8x8xi32> to vector<8x1xi32>
    %6 = vector.broadcast %5 : vector<8x1xi32> to vector<8x256xi32>
    %7 = arith.cmpi eq, %1, %6 : vector<8x256xi32>
    %8 = arith.ori %4, %7 : vector<8x256xi1>
    %9 = vector.extract_strided_slice %0 {offsets = [0, 2], sizes = [8, 1], strides = [1, 1]} : vector<8x8xi32> to vector<8x1xi32>
    %10 = vector.broadcast %9 : vector<8x1xi32> to vector<8x256xi32>
    %11 = arith.cmpi eq, %1, %10 : vector<8x256xi32>
    %12 = arith.ori %8, %11 : vector<8x256xi1>
    %13 = vector.extract_strided_slice %0 {offsets = [0, 3], sizes = [8, 1], strides = [1, 1]} : vector<8x8xi32> to vector<8x1xi32>
    %14 = vector.broadcast %13 : vector<8x1xi32> to vector<8x256xi32>
    %15 = arith.cmpi eq, %1, %14 : vector<8x256xi32>
    %16 = arith.ori %12, %15 : vector<8x256xi1>
    %17 = arith.extui %16 : vector<8x256xi1> to vector<8x256xi32>
    %18 = arith.sitofp %17 : vector<8x256xi32> to vector<8x256xf32>
    %c0_1 = arith.constant 0 : index
    %c0_2 = arith.constant 0 : index
    %19 = vector.load %arg2[%c0_1, %c0_2] : memref<512x128xf32, #tpu.memory_space<vmem>>, vector<256x128xf32>
    %cst = arith.constant dense<0.000000e+00> : vector<8x128xf32>
    %20 = tpu.matmul %18, %19, %cst {dimension_numbers = #tpu.dot_dimension_numbers<[1], [0], [0], [1], [0, 0, 1, 1], [], []>} : vector<8x256xf32>, vector<256x128xf32>, vector<8x128xf32> -> vector<8x128xf32>
    %21 = vector.extract_strided_slice %0 {offsets = [0, 4], sizes = [8, 1], strides = [1, 1]} : vector<8x8xi32> to vector<8x1xi32>
    %22 = vector.broadcast %21 : vector<8x1xi32> to vector<8x256xi32>
    %23 = arith.cmpi eq, %1, %22 : vector<8x256xi32>
    %24 = vector.extract_strided_slice %0 {offsets = [0, 5], sizes = [8, 1], strides = [1, 1]} : vector<8x8xi32> to vector<8x1xi32>
    %25 = vector.broadcast %24 : vector<8x1xi32> to vector<8x256xi32>
    %26 = arith.cmpi eq, %1, %25 : vector<8x256xi32>
    %27 = arith.ori %23, %26 : vector<8x256xi1>
    %28 = vector.extract_strided_slice %0 {offsets = [0, 6], sizes = [8, 1], strides = [1, 1]} : vector<8x8xi32> to vector<8x1xi32>
    %29 = vector.broadcast %28 : vector<8x1xi32> to vector<8x256xi32>
    %30 = arith.cmpi eq, %1, %29 : vector<8x256xi32>
    %31 = arith.ori %27, %30 : vector<8x256xi1>
    %32 = vector.extract_strided_slice %0 {offsets = [0, 7], sizes = [8, 1], strides = [1, 1]} : vector<8x8xi32> to vector<8x1xi32>
    %33 = vector.broadcast %32 : vector<8x1xi32> to vector<8x256xi32>
    %34 = arith.cmpi eq, %1, %33 : vector<8x256xi32>
    %35 = arith.ori %31, %34 : vector<8x256xi1>
    %36 = arith.extui %35 : vector<8x256xi1> to vector<8x256xi32>
    %37 = arith.sitofp %36 : vector<8x256xi32> to vector<8x256xf32>
    %c256 = arith.constant 256 : index
    %c0_3 = arith.constant 0 : index
    %38 = vector.load %arg2[%c256, %c0_3] : memref<512x128xf32, #tpu.memory_space<vmem>>, vector<256x128xf32>
    %cst_4 = arith.constant dense<0.000000e+00> : vector<8x128xf32>
    %39 = tpu.matmul %37, %38, %cst_4 {dimension_numbers = #tpu.dot_dimension_numbers<[1], [0], [0], [1], [0, 0, 1, 1], [], []>} : vector<8x256xf32>, vector<256x128xf32>, vector<8x128xf32> -> vector<8x128xf32>
    %40 = arith.addf %20, %39 : vector<8x128xf32>
    %c0_5 = arith.constant 0 : index
    %c0_6 = arith.constant 0 : index
    %41 = vector.load %arg3[%c0_5, %c0_6] : memref<8x128xf32, #tpu.memory_space<vmem>>, vector<8x128xf32>
    tpu.vector_store %arg3[%c0_5, %c0_6], %40 {strides = array<i32>} : memref<8x128xf32, #tpu.memory_space<vmem>>, vector<8x128xf32>,
    return
  }
  func.func @transform_0(%arg0: i32) -> (i32, i32) {
    %c0_i32 = arith.constant 0 : i32
    %c0_i32_0 = arith.constant 0 : i32
    return %arg0, %c0_i32 : i32, i32
  }
  func.func @transform_1(%arg0: i32) -> (i32, i32) {
    %c0_i32 = arith.constant 0 : i32
    %c0_i32_0 = arith.constant 0 : i32
    %c0_i32_1 = arith.constant 0 : i32
    return %c0_i32, %c0_i32_0 : i32, i32
  }
  func.func @transform_2(%arg0: i32) -> (i32, i32) {
    %c0_i32 = arith.constant 0 : i32
    %c0_i32_0 = arith.constant 0 : i32
    return %arg0, %c0_i32 : i32, i32
  }
}

</mosaic_0001>

<bundles_post_ra>
// kernel: _lambda_.1
= control target key start
LH: loop header
LB: loop body
LE: loop exit
PB: predicated region body
PF: predicated region fallthrough
CT: control target
= control target key end

     0   :  { %7 = vsyncpa [#allocation3], 0  ;;  %s296_s12 = smov [#allocation2]   ;;  %s297_s14 = smov 128   ;;  %s332_s0 = inlined_call_operand.vmem [shape: s32[8,8], index: 0, kind: input, shape index: {}]   ;;  %s333_s1 = inlined_call_operand.hbm [shape: f32[512,128], index: 1, kind: input, shape index: {}]   ;;  %s334_s2 = inlined_call_operand.vmem [shape: f32[8,128], index: 2, kind: output, shape index: {}]  }
   0x1   :  { %s14_s11 = sshll.u32 %s333_s1, 4  ;;  %s16_s13 = sshll.u32 %s296_s12, 4  ;;  %s15_s11 = int_to_ptr.hbm [resolvable:$true] %s14_s11  ;;  %s17_s13 = int_to_ptr.vmem [resolvable:$true] %s16_s13 }
   0x2   :  { %s298_s15 = smov 8  }
   0x3   :  { %22 = dma.hbm_to_vmem [thread:$0]  %s15_s11, 8192, %s17_s13, [#allocation3], %s297_s14, %s297_s14, %s298_s15  }
   0x4   :  { %294 = dma.done.wait [#allocation3], 8192  }
   0x5   :  { %295 = vsyncadd [#allocation3], 4294959104  ;;  %v299_v0 = vmov 2   ;;  %v300_v1 = vmov 0   ;;  %v301_v2 = vmov 4   ;;  %v27_v3 = vld [vmem:[%s332_s0] sm:$0xff] }
   0x6   :  { %263 = vset.pattern.permute.xlu1 %v299_v0  ;;  %261 = vset.pattern.permute.xlu0 %v300_v1  ;;  %v76_v4 = vld [vmem:[#allocation2 + $0x78] sm:$0xff]  ;;  %v75_v6 = vld [vmem:[#allocation2 + $0x70] sm:$0xff]  ;;  %v74_v8 = vld [vmem:[#allocation2 + $0x68] sm:$0xff]  ;;  %v302_v16 = vmov 3   ;;  %v303_v17 = vmov 1   ;;  %v304_v20 = vmov 5  }
   0x7   :  { %265 = vset.pattern.permute.xlu2 %v301_v2  ;;  %v92_v5 = vld [vmem:[#allocation2 + $0xf8] sm:$0xff]  ;;  %44 = vperm.xlu1 %263, %v27_v3   ;;  %v91_v7 = vld [vmem:[#allocation2 + $0xf0] sm:$0xff]  ;;  %v90_v11 = vld [vmem:[#allocation2 + $0xe8] sm:$0xff]  ;;  %v305_v23 = vmov 6   ;;  %v306_v24 = vmov 7  }
   0x8   :  { %32 = vperm.xlu0 %261, %v27_v3   ;;  %94 = vperm.xlu2 %265, %v27_v3   ;;  %v138_v9 = vld [vmem:[#allocation2 + $0x178] sm:$0xff]  ;;  %v137_v12 = vld [vmem:[#allocation2 + $0x170] sm:$0xff]  ;;  %v73_v14 = vld [vmem:[#allocation2 + $0x60] sm:$0xff] }
   0x9   :  { %195 = vmatpush.msra.mxu2 %v76_v4  ;;  %215 = vmatpush.msra.mxu3 %v92_v5  ;;  %v154_v10 = vld [vmem:[#allocation2 + $0x1f8] sm:$0xff]  ;;  %v153_v13 = vld [vmem:[#allocation2 + $0x1f0] sm:$0xff]  ;;  %v89_v15 = vld [vmem:[#allocation2 + $0xe0] sm:$0xff] }
   0xa   :  { %155 = vmatpush.msra.mxu0 %v138_v9  ;;  %175 = vmatpush.msra.mxu1 %v154_v10  ;;  %v72_v18 = vld [vmem:[#allocation2 + $0x58] sm:$0xff]  ;;  %v71_v21 = vld [vmem:[#allocation2 + $0x50] sm:$0xff]  ;;  %v136_v25 = vld [vmem:[#allocation2 + $0x168] sm:$0xff]  ;;  %v28_v10 = vlaneseq }
   0xb   :  { %196 = vmatpush.msra.mxu2 %v75_v6  ;;  %216 = vmatpush.msra.mxu3 %v91_v7  ;;  %v88_v19 = vld [vmem:[#allocation2 + $0xd8] sm:$0xff]  ;;  %v87_v22 = vld [vmem:[#allocation2 + $0xd0] sm:$0xff]  ;;  %v152_v26 = vld [vmem:[#allocation2 + $0x1e8] sm:$0xff] }
   0xc   :  { %156 = vmatpush.msra.mxu0 %v137_v12  ;;  %176 = vmatpush.msra.mxu1 %v153_v13  ;;  %v70_v27 = vld [vmem:[#allocation2 + $0x48] sm:$0xff]  ;;  %v135_v29 = vld [vmem:[#allocation2 + $0x160] sm:$0xff]  ;;  %v134_v33 = vld [vmem:[#allocation2 + $0x158] sm:$0xff]  ;;  %v29_v13 = vand.u32 127, %v28_v10 }
   0xd   :  { %197 = vmatpush.msra.mxu2 %v74_v8  ;;  %217 = vmatpush.msra.mxu3 %v90_v11  ;;  %v86_v28 = vld [vmem:[#allocation2 + $0xc8] sm:$0xff]  ;;  %v151_v30 = vld [vmem:[#allocation2 + $0x1e0] sm:$0xff]  ;;  %v150_v34 = vld [vmem:[#allocation2 + $0x1d8] sm:$0xff] }
   0xe   :  { %157 = vmatpush.msra.mxu0 %v136_v25  ;;  %177 = vmatpush.msra.mxu1 %v152_v26  ;;  %v69_v31 = vld [vmem:[#allocation2 + $0x40] sm:$0xff]  ;;  %v68_v35 = vld [vmem:[#allocation2 + $0x38] sm:$0xff]  ;;  %v133_v37 = vld [vmem:[#allocation2 + $0x150] sm:$0xff] }
   0xf   :  { %198 = vmatpush.msra.mxu2 %v73_v14  ;;  %264 = vset.pattern.permute.xlu1 %v302_v16  ;;  %v85_v32 = vld [vmem:[#allocation2 + $0xc0] sm:$0xff]  ;;  %v84_v36 = vld [vmem:[#allocation2 + $0xb8] sm:$0xff]  ;;  %v149_v38 = vld [vmem:[#allocation2 + $0x1d0] sm:$0xff]  ;;  %v30_v14 = vadd.s32 128, %v29_v13 }
  0x10   :  { %262 = vset.pattern.permute.xlu0 %v303_v17  ;;  %51 = vperm.xlu1 %264, %v27_v3   ;;  %v67_v39 = vld [vmem:[#allocation2 + $0x30] sm:$0xff]  ;;  %v132_v41 = vld [vmem:[#allocation2 + $0x148] sm:$0xff]  ;;  %v131_v45 = vld [vmem:[#allocation2 + $0x140] sm:$0xff] }
  0x11   :  { %37 = vperm.xlu0 %262, %v27_v3   ;;  %266 = vset.pattern.permute.xlu2 %v304_v20  ;;  %v83_v40 = vld [vmem:[#allocation2 + $0xb0] sm:$0xff]  ;;  %v148_v42 = vld [vmem:[#allocation2 + $0x1c8] sm:$0xff]  ;;  %v147_v46 = vld [vmem:[#allocation2 + $0x1c0] sm:$0xff] }
  0x12   :  { %218 = vmatpush.msra.mxu3 %v89_v15  ;;  %99 = vperm.xlu2 %266, %v27_v3   ;;  %v66_v43 = vld [vmem:[#allocation2 + $0x28] sm:$0xff]  ;;  %v65_v47 = vld [vmem:[#allocation2 + $0x20] sm:$0xff]  ;;  %v130_v49 = vld [vmem:[#allocation2 + $0x138] sm:$0xff] }
  0x13   :  { %199 = vmatpush.msra.mxu2 %v72_v18  ;;  %158 = vmatpush.msra.mxu0 %v135_v29  ;;  %v82_v44 = vld [vmem:[#allocation2 + $0xa8] sm:$0xff]  ;;  %v81_v48 = vld [vmem:[#allocation2 + $0xa0] sm:$0xff]  ;;  %v146_v50 = vld [vmem:[#allocation2 + $0x1b8] sm:$0xff]  ;;  %v307_v18 = vmov 1.0  }
  0x14   :  { %219 = vmatpush.msra.mxu3 %v88_v19  ;;  %178 = vmatpush.msra.mxu1 %v151_v30  ;;  %v64_v51 = vld [vmem:[#allocation2 + $0x18] sm:$0xff]  ;;  %v129_v53 = vld [vmem:[#allocation2 + $0x130] sm:$0xff]  ;;  %v128_v57 = vld [vmem:[#allocation2 + $0x128] sm:$0xff] }
  0x15   :  { %200 = vmatpush.msra.mxu2 %v71_v21  ;;  %159 = vmatpush.msra.mxu0 %v134_v33  ;;  %v80_v52 = vld [vmem:[#allocation2 + $0x98] sm:$0xff]  ;;  %v145_v54 = vld [vmem:[#allocation2 + $0x1b0] sm:$0xff]  ;;  %v144_v58 = vld [vmem:[#allocation2 + $0x1a8] sm:$0xff] }
  0x16   :  { %220 = vmatpush.msra.mxu3 %v87_v22  ;;  %179 = vmatpush.msra.mxu1 %v150_v34  ;;  %v63_v55 = vld [vmem:[#allocation2 + $0x10] sm:$0xff]  ;;  %v62_v59 = vld [vmem:[#allocation2 + $0x8] sm:$0xff]  ;;  %v127_v61 = vld [vmem:[#allocation2 + $0x120] sm:$0xff] }
  0x17   :  { %201 = vmatpush.msra.mxu2 %v70_v27  ;;  %160 = vmatpush.msra.mxu0 %v133_v37  ;;  %v79_v56 = vld [vmem:[#allocation2 + $0x90] sm:$0xff]  ;;  %v78_v60 = vld [vmem:[#allocation2 + $0x88] sm:$0xff]  ;;  %v143_v62 = vld [vmem:[#allocation2 + $0x1a0] sm:$0xff] }
  0x18   :  { %267 = vset.pattern.permute.xlu1 %v305_v23  ;;  %221 = vmatpush.msra.mxu3 %v86_v28  ;;  %v61_v63 = vld [vmem:[#allocation2] sm:$0xff]  ;;  %v126_v1 = vld [vmem:[#allocation2 + $0x118] sm:$0xff]  ;;  %v141_v4 = vld [vmem:[#allocation2 + $0x190] sm:$0xff] }
  0x19   :  { %269 = vset.pattern.permute.xlu0 %v306_v24  ;;  %106 = vperm.xlu1 %267, %v27_v3   ;;  %v77_v0 = vld [vmem:[#allocation2 + $0x80] sm:$0xff]  ;;  %v142_v2 = vld [vmem:[#allocation2 + $0x198] sm:$0xff]  ;;  %v124_v5 = vld [vmem:[#allocation2 + $0x108] sm:$0xff] }
  0x1a   :  { %268 = vset.pattern.permute.xlu2 %v306_v24  ;;  %202 = vmatpush.msra.mxu2 %v69_v31  ;;  %v140_v6 = vld [vmem:[#allocation2 + $0x188] sm:$0xff]  ;;  %v123_v7 = vld [vmem:[#allocation2 + $0x100] sm:$0xff] }
  0x1b   :  { %113 = vperm.xlu2 %268, %v27_v3   ;;  %222 = vmatpush.msra.mxu3 %v85_v32  ;;  %v125_v3 = vld [vmem:[#allocation2 + $0x110] sm:$0xff]  ;;  %v139_v8 = vld [vmem:[#allocation2 + $0x180] sm:$0xff] }
  0x1c   :  { %203 = vmatpush.msra.mxu2 %v68_v35  ;;  %180 = vmatpush.msra.mxu1 %v149_v38 }
  0x1d   :  { %223 = vmatpush.msra.mxu3 %v84_v36  ;;  %161 = vmatpush.msra.mxu0 %v132_v41 }
  0x1e   :  { %204 = vmatpush.msra.mxu2 %v67_v39  ;;  %181 = vmatpush.msra.mxu1 %v148_v42 }
  0x1f   :  { %224 = vmatpush.msra.mxu3 %v83_v40  ;;  %162 = vmatpush.msra.mxu0 %v131_v45 }
  0x20   :  { %205 = vmatpush.msra.mxu2 %v66_v43  ;;  %182 = vmatpush.msra.mxu1 %v147_v46 }
  0x21   :  { %225 = vmatpush.msra.mxu3 %v82_v44  ;;  %163 = vmatpush.msra.mxu0 %v130_v49 }
  0x22   :  { %206 = vmatpush.msra.mxu2 %v65_v47  ;;  %183 = vmatpush.msra.mxu1 %v146_v50 }
  0x23   :  { %226 = vmatpush.msra.mxu3 %v81_v48  ;;  %164 = vmatpush.msra.mxu0 %v129_v53 }
  0x24   :  { %207 = vmatpush.msra.mxu2 %v64_v51  ;;  %184 = vmatpush.msra.mxu1 %v145_v54 }
  0x25   :  { %227 = vmatpush.msra.mxu3 %v80_v52  ;;  %165 = vmatpush.msra.mxu0 %v128_v57 }
  0x26   :  { %208 = vmatpush.msra.mxu2 %v63_v55  ;;  %185 = vmatpush.msra.mxu1 %v144_v58 }
  0x27   :  { %228 = vmatpush.msra.mxu3 %v79_v56  ;;  %166 = vmatpush.msra.mxu0 %v127_v61 }
  0x28   :  { %209 = vmatpush.msra.mxu2 %v62_v59  ;;  %186 = vmatpush.msra.mxu1 %v143_v62 }
  0x29   :  { %229 = vmatpush.msra.mxu3 %v78_v60  ;;  %167 = vmatpush.msra.mxu0 %v126_v1 }
  0x2a   :  { %210 = vmatpush.msra.mxu2 %v61_v63  ;;  %187 = vmatpush.msra.mxu1 %v142_v2 }
  0x2b   :  { %230 = vmatpush.msra.mxu3 %v77_v0  ;;  %168 = vmatpush.msra.mxu0 %v125_v3 }
  0x2c   :  { %188 = vmatpush.msra.mxu1 %v141_v4 }
  0x2d   :  { %169 = vmatpush.msra.mxu0 %v124_v5 }
  0x2e   :  { %189 = vmatpush.msra.mxu1 %v140_v6 }
  0x2f   :  { %170 = vmatpush.msra.mxu0 %v123_v7 }
  0x30   :  { %190 = vmatpush.msra.mxu1 %v139_v8 }
  0x62   :  { %v95_v9 = vpop.permute.xlu2 %94 }
  0x63   :  { %vm96_vm11 = vcmp.eq.s32.totalorder %v29_v13, %v95_v9  ;;  %vm97_vm15 = vcmp.eq.s32.totalorder %v30_v14, %v95_v9 }
  0x6c   :  { %v100_v15 = vpop.permute.xlu2 %99 }
  0x6d   :  { %vm101_vm12 = vcmp.eq.s32.totalorder %v29_v13, %v100_v15 }
  0x75   :  { %v114_v19 = vpop.permute.xlu2 %113 }
  0x79   :  { %v45_v11 = vpop.permute.xlu1 %44 }
  0x7a   :  { %v33_v12 = vpop.permute.xlu0 %32  ;;  %vm46_vm5 = vcmp.eq.s32.totalorder %v29_v13, %v45_v11  ;;  %vm47_vm7 = vcmp.eq.s32.totalorder %v30_v14, %v45_v11 }
  0x7b   :  { %vm34_vm0 = vcmp.eq.s32.totalorder %v29_v13, %v33_v12  ;;  %vm35_vm3 = vcmp.eq.s32.totalorder %v30_v14, %v33_v12 }
  0x82   :  { %v52_v16 = vpop.permute.xlu1 %51 }
  0x83   :  { %v38_v17 = vpop.permute.xlu0 %37  ;;  %vm53_vm9 = vcmp.eq.s32.totalorder %v29_v13, %v52_v16  ;;  %vm54_vm13 = vcmp.eq.s32.totalorder %v30_v14, %v52_v16 }
  0x84   :  { %vm39_vm1 = vcmp.eq.s32.totalorder %v29_v13, %v38_v17  ;;  %vm40_vm2 = vcmp.eq.s32.totalorder %v30_v14, %v38_v17 }
  0x85   :  { %vm41_vm4 = vmor %vm34_vm0, %vm39_vm1  ;;  %vm102_vm0 = vcmp.eq.s32.totalorder %v30_v14, %v100_v15 }
  0x86   :  { %vm42_vm6 = vmor %vm35_vm3, %vm40_vm2 }
  0x87   :  { %vm48_vm8 = vmor %vm41_vm4, %vm46_vm5 }
  0x88   :  { %vm49_vm10 = vmor %vm42_vm6, %vm47_vm7  ;;  %vm115_vm6 = vcmp.eq.s32.totalorder %v29_v13, %v114_v19 }
  0x89   :  { %vm55_vm14 = vmor %vm48_vm8, %vm53_vm9  ;;  %vm116_vm8 = vcmp.eq.s32.totalorder %v30_v14, %v114_v19 }
  0x8a   :  { %247 = vmatmul.msk.f32.vlgmr.msra.gmra.mxu2 %vm55_vm14, %v307_v18  ;;  %vm56_vm1 = vmor %vm49_vm10, %vm54_vm13 }
  0x8b   :  { %248 = vmatmul.msk.f32.vlgmr.msra.gmra.mxu3 %vm56_vm1, %v307_v18  ;;  %vm103_vm2 = vmor %vm96_vm11, %vm101_vm12  ;;  %v107_v20 = vpop.permute.xlu1 %106 }
  0x8c   :  { %vm104_vm3 = vmor %vm97_vm15, %vm102_vm0  ;;  %vm108_vm4 = vcmp.eq.s32.totalorder %v29_v13, %v107_v20  ;;  %vm109_vm5 = vcmp.eq.s32.totalorder %v30_v14, %v107_v20 }
  0x8d   :  { %vm110_vm7 = vmor %vm103_vm2, %vm108_vm4 }
  0x8e   :  { %vm111_vm9 = vmor %vm104_vm3, %vm109_vm5 }
  0x8f   :  { %vm117_vm14 = vmor %vm110_vm7, %vm115_vm6 }
  0x90   :  { %vm118_vm10 = vmor %vm111_vm9, %vm116_vm8  ;;  %245 = vmatmul.msk.f32.vlgmr.msra.gmra.mxu0 %vm117_vm14, %v307_v18 }
  0x91   :  { %246 = vmatmul.msk.f32.vlgmr.msra.gmra.mxu1 %vm118_vm10, %v307_v18 }
 0x10d   :  { %v172_v21 = vpop.f32.mrf.mxu0  ;;  %v212_v24 = vpop.f32.mrf.mxu2 }
 0x10e   :  { %v192_v22 = vpop.f32.mrf.mxu1  ;;  %v232_v26 = vpop.f32.mrf.mxu3 }
 0x10f   :  { %v193_v23 = vadd.f32 %v192_v22, %v172_v21 }
 0x111   :  { %v213_v25 = vadd.f32 %v212_v24, %v193_v23 }
 0x113   :  { %v233_v27 = vadd.f32 %v232_v26, %v213_v25 }
 0x115   :  { %235 = vst [vmem:[%s334_s2] sm:$0xff] %v233_v27 }
 0x116   :  { %240 = vsyncpa [#allocation3], 1 }

</bundles_post_ra>
